<compile_context>
chip_gen: v7x
topology: tpu7x:2x2x1
jax: 0.10.0
libtpu: 0.0.40
codegen_flags: <defaults>
</compile_context>

<pallas_src>
import jax
import jax.numpy as jnp
from jax.experimental import pallas as pl
from jax.experimental.pallas import tpu as pltpu

LANE = 128      # TPU lane width; fc2 weight padded to this inside the kernel
OUT_PAD = 8     # HBM output width (2 useful cols padded to one sublane-tile row)
TB_MAX = 4096   # max batch-tile rows (~15 MiB VMEM footprint incl. temps)


def _round_up(n, m):
    return ((n + m - 1) // m) * m


def dqn_kernel(x_ref, w1_ref, b1_ref, w2_ref, b2_ref, o_ref):
    x = x_ref[...]                                              # (TB, 4)   f32

    # fc1 on the MXU: K=4 underutilizes the contraction dim, but the MXU has
    # slack (fc2 is tiny) and this avoids per-column lane-extract + broadcast
    # (XLU) and the 4x mul/add VALU chain of the old FMA loop. ReLU fused.
    h = jnp.dot(x, w1_ref[...], preferred_element_type=jnp.float32) + b1_ref[...]
    h = jnp.maximum(h, 0.0)                                     # (TB, 256)

    # fc2 on the MXU: (TB, 256) @ (256, 128-padded); result stays lane-dense.
    o = jnp.dot(h, w2_ref[...], preferred_element_type=jnp.float32)

    # Store only the first OUT_PAD lanes (same vreg positions as the narrow
    # output ref -> no lane movement, just masked stores). Narrow HBM writeback.
    o_ref[...] = o[:, : o_ref.shape[1]] + b2_ref[...]


@jax.jit
def dqn_forward(x, w1, b1, w2, b2):
    B, in_dim = x.shape
    hid = w1.shape[1]
    out_dim = w2.shape[1]

    # fc2 weight padded to a full 128-lane slab (zeros are free on the MXU);
    # bias padded only to the narrow OUT_PAD output width.
    w2p = jnp.zeros((hid, LANE), w2.dtype).at[:, :out_dim].set(w2)
    b2p = jnp.zeros((1, OUT_PAD), b2.dtype).at[:, :out_dim].set(b2)

    # Pad the batch only to a sublane multiple; partial boundary blocks handle
    # the rest (no full-tile padding / garbage compute).
    B8 = _round_up(B, 8)
    if B8 != B:
        x = jnp.pad(x, ((0, B8 - B), (0, 0)))

    # Tile selection: big tiles to amortize the ~0.35us/step overhead, but
    # guarantee >= 2 grid steps for mid-size batches so v7x's 2nd TC gets work.
    if B8 >= 2 * TB_MAX:
        TB = TB_MAX
    elif B8 > 2048:
        TB = _round_up(pl.cdiv(B8, 2), 8)
    else:
        TB = B8
    grid = (pl.cdiv(B8, TB),)

    flops = 2 * B8 * (in_dim * hid + hid * out_dim)
    bytes_accessed = (
        B8 * in_dim * 4 + B8 * OUT_PAD * 4            # x read, out write
        + (in_dim * hid + hid) * 4                     # w1, b1
        + (hid * LANE + OUT_PAD) * 4                   # w2 (padded), b2
    )

    out = pl.pallas_call(
        dqn_kernel,
        out_shape=jax.ShapeDtypeStruct((B8, OUT_PAD), jnp.float32),
        grid_spec=pl.GridSpec(
            grid=grid,
            in_specs=[
                pl.BlockSpec((TB, in_dim), lambda i: (i, 0)),   # x: tiled over batch
                pl.BlockSpec(w1.shape, lambda i: (0, 0)),       # weights VMEM-resident
                pl.BlockSpec(b1.shape, lambda i: (0, 0)),
                pl.BlockSpec(w2p.shape, lambda i: (0, 0)),
                pl.BlockSpec(b2p.shape, lambda i: (0, 0)),
            ],
            out_specs=pl.BlockSpec((TB, OUT_PAD), lambda i: (i, 0)),
        ),
        compiler_params=pltpu.CompilerParams(
            # Batch axis is embarrassingly parallel -> shard across TCs on v7x.
            dimension_semantics=("parallel",),
            # ~15 MiB actually used at TB=4096; 32 MiB is safe on v5e/v6e/v7x.
            vmem_limit_bytes=32 * 1024 * 1024,
        ),
        cost_estimate=pl.CostEstimate(
            flops=flops, transcendentals=0, bytes_accessed=bytes_accessed
        ),
    )(x, w1, b1, w2p, b2p)

    return out[:B, :out_dim]


def init_params(key):
    """Deterministic init mimicking nn.Linear default (uniform +/- 1/sqrt(fan_in))."""
    k1, k2, k3, k4 = jax.random.split(key, 4)
    in1, hid, out = 4, 256, 2
    bound1 = 1.0 / jnp.sqrt(in1)
    bound2 = 1.0 / jnp.sqrt(hid)
    w1 = jax.random.uniform(k1, (in1, hid), jnp.float32, -bound1, bound1)
    b1 = jax.random.uniform(k2, (1, hid), jnp.float32, -bound1, bound1)
    w2 = jax.random.uniform(k3, (hid, out), jnp.float32, -bound2, bound2)
    b2 = jax.random.uniform(k4, (1, out), jnp.float32, -bound2, bound2)
    return w1, b1, w2, b2


def reference_forward(x, w1, b1, w2, b2):
    h = jnp.maximum(x @ w1 + b1, 0.0)
    return h @ w2 + b2


if __name__ == "__main__":
    key = jax.random.PRNGKey(0)
    k_params, k_x = jax.random.split(key)

    w1, b1, w2, b2 = init_params(k_params)

    # Small batch consistent with the module (state dim 4 from nn.Linear(4, 256)).
    B = 2
    x = jax.random.normal(k_x, (B, 4), jnp.float32)

    out = jax.block_until_ready(dqn_forward(x, w1, b1, w2, b2))
    ref = reference_forward(x, w1, b1, w2, b2)
    assert out.shape == (B, 2)
    assert jnp.allclose(out, ref, atol=1e-5, rtol=1e-5)

    # Also exercise a ragged, multi-step (2-grid-step) batch.
    B2 = 4100
    x2 = jax.random.normal(jax.random.PRNGKey(1), (B2, 4), jnp.float32)
    out2 = jax.block_until_ready(dqn_forward(x2, w1, b1, w2, b2))
    ref2 = reference_forward(x2, w1, b1, w2, b2)
    assert out2.shape == (B2, 2)
    assert jnp.allclose(out2, ref2, atol=1e-4, rtol=1e-4)

    print("KERNEL_OK")
</pallas_src>

<mosaic_0001>
module attributes {stable_mosaic.version = 11 : i64} {
  func.func @dqn_kernel(%arg0: i32, %arg1: memref<8x4xf32, #tpu.memory_space<vmem>>, %arg2: memref<4x256xf32, #tpu.memory_space<vmem>>, %arg3: memref<1x256xf32, #tpu.memory_space<vmem>>, %arg4: memref<256x128xf32, #tpu.memory_space<vmem>>, %arg5: memref<1x8xf32, #tpu.memory_space<vmem>>, %arg6: memref<8x8xf32, #tpu.memory_space<vmem>>) attributes {dimension_semantics = [#tpu.dimension_semantics<parallel>], iteration_bounds = array<i64: 1>, scalar_prefetch = 0 : i64, scratch_operands = 0 : i64, tpu.core_type = #tpu.core_type<tc>, window_params = [{transform_indices = @transform_0, window_bounds = array<i64: 8, 4>}, {pipeline_mode = #tpu.pipeline_mode<synchronous>, transform_indices = @transform_1, window_bounds = array<i64: 4, 256>}, {pipeline_mode = #tpu.pipeline_mode<synchronous>, transform_indices = @transform_2, window_bounds = array<i64: 1, 256>}, {pipeline_mode = #tpu.pipeline_mode<synchronous>, transform_indices = @transform_3, window_bounds = array<i64: 256, 128>}, {pipeline_mode = #tpu.pipeline_mode<synchronous>, transform_indices = @transform_4, window_bounds = array<i64: 1, 8>}, {transform_indices = @transform_5, window_bounds = array<i64: 8, 8>}]} {
    %c0 = arith.constant 0 : index
    %c0_0 = arith.constant 0 : index
    %0 = vector.load %arg1[%c0, %c0_0] : memref<8x4xf32, #tpu.memory_space<vmem>>, vector<8x4xf32>
    %c0_1 = arith.constant 0 : index
    %c0_2 = arith.constant 0 : index
    %1 = vector.load %arg2[%c0_1, %c0_2] : memref<4x256xf32, #tpu.memory_space<vmem>>, vector<4x256xf32>
    %cst = arith.constant dense<0.000000e+00> : vector<8x256xf32>
    %2 = tpu.matmul %0, %1, %cst {dimension_numbers = #tpu.dot_dimension_numbers<[1], [0], [0], [1], [0, 0, 1, 1], [], []>} : vector<8x4xf32>, vector<4x256xf32>, vector<8x256xf32> -> vector<8x256xf32>
    %c0_3 = arith.constant 0 : index
    %c0_4 = arith.constant 0 : index
    %3 = vector.load %arg3[%c0_3, %c0_4] : memref<1x256xf32, #tpu.memory_space<vmem>>, vector<1x256xf32>
    %4 = vector.broadcast %3 : vector<1x256xf32> to vector<8x256xf32>
    %5 = arith.addf %2, %4 : vector<8x256xf32>
    %cst_5 = arith.constant 0.000000e+00 : f32
    %6 = vector.broadcast %cst_5 : f32 to vector<8x256xf32>
    %7 = arith.maximumf %5, %6 : vector<8x256xf32>
    %c0_6 = arith.constant 0 : index
    %c0_7 = arith.constant 0 : index
    %8 = vector.load %arg4[%c0_6, %c0_7] : memref<256x128xf32, #tpu.memory_space<vmem>>, vector<256x128xf32>
    %cst_8 = arith.constant dense<0.000000e+00> : vector<8x128xf32>
    %9 = tpu.matmul %7, %8, %cst_8 {dimension_numbers = #tpu.dot_dimension_numbers<[1], [0], [0], [1], [0, 0, 1, 1], [], []>} : vector<8x256xf32>, vector<256x128xf32>, vector<8x128xf32> -> vector<8x128xf32>
    %10 = vector.extract_strided_slice %9 {offsets = [0, 0], sizes = [8, 8], strides = [1, 1]} : vector<8x128xf32> to vector<8x8xf32>
    %c0_9 = arith.constant 0 : index
    %c0_10 = arith.constant 0 : index
    %11 = vector.load %arg5[%c0_9, %c0_10] : memref<1x8xf32, #tpu.memory_space<vmem>>, vector<1x8xf32>
    %12 = vector.broadcast %11 : vector<1x8xf32> to vector<8x8xf32>
    %13 = arith.addf %10, %12 : vector<8x8xf32>
    %c0_11 = arith.constant 0 : index
    %c0_12 = arith.constant 0 : index
    %14 = vector.load %arg6[%c0_11, %c0_12] : memref<8x8xf32, #tpu.memory_space<vmem>>, vector<8x8xf32>
    tpu.vector_store %arg6[%c0_11, %c0_12], %13 {strides = array<i32>} : memref<8x8xf32, #tpu.memory_space<vmem>>, vector<8x8xf32>,
    return
  }
  func.func @transform_0(%arg0: i32) -> (i32, i32) {
    %c0_i32 = arith.constant 0 : i32
    %c0_i32_0 = arith.constant 0 : i32
    return %arg0, %c0_i32 : i32, i32
  }
  func.func @transform_1(%arg0: i32) -> (i32, i32) {
    %c0_i32 = arith.constant 0 : i32
    %c0_i32_0 = arith.constant 0 : i32
    %c0_i32_1 = arith.constant 0 : i32
    return %c0_i32, %c0_i32_0 : i32, i32
  }
  func.func @transform_2(%arg0: i32) -> (i32, i32) {
    %c0_i32 = arith.constant 0 : i32
    %c0_i32_0 = arith.constant 0 : i32
    %c0_i32_1 = arith.constant 0 : i32
    return %c0_i32, %c0_i32_0 : i32, i32
  }
  func.func @transform_3(%arg0: i32) -> (i32, i32) {
    %c0_i32 = arith.constant 0 : i32
    %c0_i32_0 = arith.constant 0 : i32
    %c0_i32_1 = arith.constant 0 : i32
    return %c0_i32, %c0_i32_0 : i32, i32
  }
  func.func @transform_4(%arg0: i32) -> (i32, i32) {
    %c0_i32 = arith.constant 0 : i32
    %c0_i32_0 = arith.constant 0 : i32
    %c0_i32_1 = arith.constant 0 : i32
    return %c0_i32, %c0_i32_0 : i32, i32
  }
  func.func @transform_5(%arg0: i32) -> (i32, i32) {
    %c0_i32 = arith.constant 0 : i32
    %c0_i32_0 = arith.constant 0 : i32
    return %arg0, %c0_i32 : i32, i32
  }
}

</mosaic_0001>

<bundles_post_ra>
// kernel: dqn_forward.1
= control target key start
LH: loop header
LB: loop body
LE: loop exit
PB: predicated region body
PF: predicated region fallthrough
CT: control target
= control target key end

     0   :  { %vm40_vm0 = vcmask 1043456   ;;  %v307_v1 = vmov 0.0   ;;  %vm36_vm1 = vcmask 31744   ;;  %v24_v52 = vlaneseq  ;;  %s451_s1 = inlined_call_operand.vmem [shape: f32[4,256], index: 1, kind: input, shape index: {}]   ;;  %s452_s0 = inlined_call_operand.vmem [shape: f32[8,4], index: 0, kind: input, shape index: {}]   ;;  %s453_s3 = inlined_call_operand.vmem [shape: f32[256,128], index: 3, kind: input, shape index: {}]   ;;  %s454_s2 = inlined_call_operand.vmem [shape: f32[1,256], index: 2, kind: input, shape index: {}]   ;;  %s455_s4 = inlined_call_operand.vmem [shape: f32[1,8], index: 4, kind: input, shape index: {}]   ;;  %s456_s5 = inlined_call_operand.vmem [shape: f32[8,8], index: 5, kind: output, shape index: {}]  }
   0x1   :  { %v21_v0 = vld [vmem:[%s451_s1] sm:$0xff]  ;;  %109 = vmatprep.mubr.f32.mxu0 %v307_v1  ;;  %v135_v5 = vld [vmem:[%s453_s3 + $0x88] sm:$0xff]  ;;  %v136_v10 = vld [vmem:[%s453_s3 + $0x90] sm:$0xff]  ;;  %vm228_vm2 = vcmask 64512  }
   0x2   :  { %v20_v2 = vld [vmem:[%s452_s0] sm:$0xff]  ;;  %v35_v4 = vcombine.high %v21_v0, %v21_v0  ;;  %v119_v7 = vld [vmem:[%s453_s3 + $0x8] sm:$0xff]  ;;  %v137_v11 = vld [vmem:[%s453_s3 + $0x98] sm:$0xff]  ;;  %v25_v53 = vshrl.u32 %v24_v52, 7 }
   0x3   :  { %v134_v3 = vld [vmem:[%s453_s3 + $0x80] sm:$0xff]  ;;  %v120_v12 = vld [vmem:[%s453_s3 + $0x10] sm:$0xff]  ;;  %v277_v13 = vpack.c.bf16 %v137_v11, %v136_v10  ;;  %v121_v14 = vld [vmem:[%s453_s3 + $0x18] sm:$0xff] }
   0x4   :  { %v118_v6 = vld [vmem:[%s453_s3] sm:$0xff]  ;;  %v273_v8 = vpack.c.bf16 %v135_v5, %v134_v3  ;;  %234 = vmatprep.subr.msk.mxu0 %vm40_vm0, %v35_v4  ;;  %v139_v16 = vld [vmem:[%s453_s3 + $0xa8] sm:$0xff]  ;;  %v279_v17 = vpack.c.bf16 %v121_v14, %v120_v12  ;;  %v140_v21 = vld [vmem:[%s453_s3 + $0xb0] sm:$0xff]  ;;  %v26_v54 = vsub.s32 0, %v25_v53  ;;  %v30_v56 = vsub.s32 1, %v25_v53 }
   0x5   :  { %v275_v9 = vpack.c.bf16 %v119_v7, %v118_v6  ;;  %v138_v15 = vld [vmem:[%s453_s3 + $0xa0] sm:$0xff]  ;;  %235 = vmatpush1.msk.msra.mxu0 %vm40_vm0, %v21_v0  ;;  %v123_v20 = vld [vmem:[%s453_s3 + $0x28] sm:$0xff]  ;;  %v141_v22 = vld [vmem:[%s453_s3 + $0xb8] sm:$0xff] }
   0x6   :  { %274 = vmatprep.subr.bf16.mxu1 %v273_v8  ;;  %236 = vmatmul.mubr.msk.f32.vlgmr.msra.gmra.mrb[0].mxu0 %vm36_vm1, %v20_v2  ;;  %v281_v18 = vpack.c.bf16 %v139_v16, %v138_v15  ;;  %v122_v19 = vld [vmem:[%s453_s3 + $0x20] sm:$0xff]  ;;  %v285_v24 = vpack.c.bf16 %v141_v22, %v140_v21  ;;  %v124_v25 = vld [vmem:[%s453_s3 + $0x30] sm:$0xff]  ;;  %v125_v26 = vld [vmem:[%s453_s3 + $0x38] sm:$0xff] }
   0x7   :  { %276 = vmatpush3.bf16.msra.mxu1 %v275_v9  ;;  %v283_v23 = vpack.c.bf16 %v123_v20, %v122_v19  ;;  %v142_v27 = vld [vmem:[%s453_s3 + $0xc0] sm:$0xff]  ;;  %v143_v28 = vld [vmem:[%s453_s3 + $0xc8] sm:$0xff]  ;;  %v287_v29 = vpack.c.bf16 %v125_v26, %v124_v25  ;;  %v144_v33 = vld [vmem:[%s453_s3 + $0xd0] sm:$0xff] }
   0x8   :  { %278 = vmatprep.subr.bf16.mxu1 %v277_v13  ;;  %v289_v30 = vpack.c.bf16 %v143_v28, %v142_v27  ;;  %v126_v31 = vld [vmem:[%s453_s3 + $0x40] sm:$0xff]  ;;  %v127_v32 = vld [vmem:[%s453_s3 + $0x48] sm:$0xff]  ;;  %v145_v34 = vld [vmem:[%s453_s3 + $0xd8] sm:$0xff] }
   0x9   :  { %v291_v35 = vpack.c.bf16 %v127_v32, %v126_v31  ;;  %v293_v36 = vpack.c.bf16 %v145_v34, %v144_v33  ;;  %v128_v37 = vld [vmem:[%s453_s3 + $0x50] sm:$0xff]  ;;  %v129_v38 = vld [vmem:[%s453_s3 + $0x58] sm:$0xff]  ;;  %v146_v39 = vld [vmem:[%s453_s3 + $0xe0] sm:$0xff] }
   0xa   :  { %v147_v40 = vld [vmem:[%s453_s3 + $0xe8] sm:$0xff]  ;;  %v295_v41 = vpack.c.bf16 %v129_v38, %v128_v37  ;;  %v130_v43 = vld [vmem:[%s453_s3 + $0x60] sm:$0xff]  ;;  %v148_v46 = vld [vmem:[%s453_s3 + $0xf0] sm:$0xff] }
   0xb   :  { %280 = vmatpush3.bf16.msra.mxu1 %v279_v17  ;;  %v297_v42 = vpack.c.bf16 %v147_v40, %v146_v39  ;;  %v131_v44 = vld [vmem:[%s453_s3 + $0x68] sm:$0xff]  ;;  %v149_v47 = vld [vmem:[%s453_s3 + $0xf8] sm:$0xff]  ;;  %v132_v49 = vld [vmem:[%s453_s3 + $0x70] sm:$0xff] }
   0xc   :  { %282 = vmatprep.subr.bf16.mxu1 %v281_v18  ;;  %v299_v45 = vpack.c.bf16 %v131_v44, %v130_v43  ;;  %v301_v48 = vpack.c.bf16 %v149_v47, %v148_v46  ;;  %v133_v50 = vld [vmem:[%s453_s3 + $0x78] sm:$0xff]  ;;  %v22_v55 = vld [vmem:[%s454_s2] sm:$0x3] }
   0xd   :  { %v303_v51 = vpack.c.bf16 %v133_v50, %v132_v49  ;;  %v27_v57 = vrot.slane %v22_v55, %v26_v54  ;;  %v31_v58 = vrot.slane %v22_v55, %v30_v56  ;;  %v237_v3 = vld [vmem:[%s455_s4] ss:$0 sm:$0xff] }
   0xf   :  { %284 = vmatpush3.bf16.msra.mxu1 %v283_v23 }
  0x10   :  { %286 = vmatprep.subr.bf16.mxu1 %v285_v24 }
  0x13   :  { %288 = vmatpush3.bf16.msra.mxu1 %v287_v29 }
  0x14   :  { %290 = vmatprep.subr.bf16.mxu1 %v289_v30 }
  0x17   :  { %292 = vmatpush3.bf16.msra.mxu1 %v291_v35 }
  0x18   :  { %294 = vmatprep.subr.bf16.mxu1 %v293_v36 }
  0x1b   :  { %296 = vmatpush3.bf16.msra.mxu1 %v295_v41 }
  0x1c   :  { %298 = vmatprep.subr.bf16.mxu1 %v297_v42 }
  0x1f   :  { %300 = vmatpush3.bf16.msra.mxu1 %v299_v45 }
  0x20   :  { %302 = vmatprep.subr.bf16.mxu1 %v301_v48 }
  0x23   :  { %304 = vmatpush3.bf16.msra.mxu1 %v303_v51 }
  0xd9   :  { %v111_v59 = vpop.f32.mrb[0].mxu0 }
  0xda   :  { %v112_v60 = vadd.f32 %v111_v59, %v27_v57  ;;  %v113_v61 = vpop.f32.mrb[1].mxu0 }
  0xdb   :  { %v114_v62 = vadd.f32 %v113_v61, %v31_v58 }
  0xdc   :  { %v116_v0 = vmax.f32 %v112_v60, 0.0 }
  0xdd   :  { %v117_v63 = vmax.f32 %v114_v62, 0.0 }
  0xdf   :  { %214 = vmatprep.mubr.f32.mxu1 %v117_v63 }
  0xe0   :  { %215 = vmatmul.mubr.f32.vlgmr.msra.gmra.mrb[0].mxu1 %v116_v0 }
 0x1b3   :  { %v270_v1 = vpop.f32.mrb[0].mxu1 }
 0x1b4   :  { %v271_v2 = vpop.f32.mrb[1].mxu1 }
 0x1b5   :  { %v272_v4 = vadd.f32 %v271_v2, %v270_v1 }
 0x1b7   :  { %v227_v5 = vadd.f32 %v272_v4, %v237_v3 }
 0x1b9   :  { %229 = vst.msk [vmem:[%s456_s5] sm:$0xff] %vm228_vm2, %v227_v5 }

</bundles_post_ra>
